<compile_context>
chip_gen: v6e
topology: v6e:2x2x1
jax: 0.10.0
libtpu: 0.0.40
codegen_flags: <defaults>
</compile_context>

<pallas_src>
import jax
import jax.numpy as jnp
from jax.experimental import pallas as pl
from jax.experimental.pallas import tpu as pltpu


# ---------------------------------------------------------------------------
# forward(): abstract in NNBaseModel -> nothing to compute, nothing to copy.
# ---------------------------------------------------------------------------
def nn_base_model_forward(x):
    # TODO(synk): NNBaseModel.forward is @abc.abstractmethod — there is no
    # concrete computation to kernelize.  Per prior perf review, we do NOT
    # materialize an identity memcpy kernel; the array is handed back as-is
    # (zero HBM traffic, zero kernel-launch cost).
    return x


# ---------------------------------------------------------------------------
# calculate_loss: total = sum_k loss_weights[k] * losses[k]
# SMEM scalar path: K is a handful of loss terms, so everything stays on the
# scalar unit — no VMEM tiles, no vector multiply, no XLU lane reduce.
# ---------------------------------------------------------------------------
def _weighted_loss_kernel(w_ref, losses_ref, total_ref):
    # w_ref, losses_ref: (K,) f32 in SMEM;  total_ref: (1, 1) f32 in SMEM.
    k_terms = w_ref.shape[0]
    total = w_ref[0] * losses_ref[0]
    for k in range(1, k_terms):            # static unroll: scalar MAC chain
        total = total + w_ref[k] * losses_ref[k]
    total_ref[0, 0] = total


def calculate_loss_total(loss_weights, losses):
    """Weighted total loss (calculate_loss semantics): sum_k w[k] * loss[k].

    NOTE: in a production model this K-element reduction should be fused into
    the concrete per-loss kernels (or computed in plain JAX) — it is kept as a
    standalone kernel here only because it is the single piece of concrete
    arithmetic NNBaseModel defines (SMEM inputs, scalar unrolled loop, SMEM
    scalar output).
    """
    w = jnp.asarray(loss_weights, jnp.float32).reshape(-1)
    l = jnp.asarray(losses, jnp.float32).reshape(-1)
    assert w.shape == l.shape and w.shape[0] >= 1, "need >=1 matching loss terms"
    out = pl.pallas_call(
        _weighted_loss_kernel,
        out_shape=jax.ShapeDtypeStruct((1, 1), jnp.float32),
        in_specs=[
            pl.BlockSpec(memory_space=pltpu.MemorySpace.SMEM),
            pl.BlockSpec(memory_space=pltpu.MemorySpace.SMEM),
        ],
        out_specs=pl.BlockSpec(memory_space=pltpu.MemorySpace.SMEM),
    )(w, l)
    return out[0, 0]


# TODO(synk): the rest of NNBaseModel (AdamW optimizer, DataLoader shuffling,
# grad-norm clipping, early stopping, state_dict save/load) is host-side
# training orchestration with no Pallas-kernel equivalent; intentionally
# omitted.


if __name__ == "__main__":
    key = jax.random.PRNGKey(0)
    kx, kl, kw = jax.random.split(key, 3)

    # Small shapes consistent with a tphenotype-style sequence-model input.
    B, T, D = 2, 8, 32   # (batch, seq, hidden)
    K = 4                # number of loss terms

    X = jax.random.normal(kx, (B, T, D), dtype=jnp.float32)
    losses = jax.random.uniform(kl, (K,), dtype=jnp.float32)
    loss_weights = jax.random.uniform(kw, (K,), dtype=jnp.float32)

    # Abstract forward: zero-cost pass-through (no kernel, per perf review).
    y = jax.block_until_ready(nn_base_model_forward(X))
    assert y.shape == X.shape and y.dtype == X.dtype
    assert jnp.array_equal(y, X), "forward pass-through mismatch"

    # Weighted total loss via the SMEM scalar-path kernel.
    total = jax.block_until_ready(calculate_loss_total(loss_weights, losses))
    ref_total = jnp.sum(loss_weights * losses)
    assert jnp.allclose(total, ref_total, rtol=1e-6, atol=1e-6), (
        f"weighted loss mismatch: {total} vs {ref_total}"
    )

    # K = 1 edge case (single loss term) through the same kernel.
    total1 = jax.block_until_ready(
        calculate_loss_total(loss_weights[:1], losses[:1])
    )
    assert jnp.allclose(total1, loss_weights[0] * losses[0], rtol=1e-6, atol=1e-6)

    print("KERNEL_OK")
</pallas_src>

<mosaic_0001>
module attributes {stable_mosaic.version = 11 : i64} {
  func.func @_weighted_loss_kernel(%arg0: memref<4xf32, #tpu.memory_space<smem>>, %arg1: memref<4xf32, #tpu.memory_space<smem>>, %arg2: memref<1x1xf32, #tpu.memory_space<smem>>) attributes {dimension_semantics = [], scalar_prefetch = 0 : i64, scratch_operands = 0 : i64, tpu.core_type = #tpu.core_type<tc>} {
    %c0 = arith.constant 0 : index
    %0 = memref.load %arg0[%c0] : memref<4xf32, #tpu.memory_space<smem>>
    %c0_0 = arith.constant 0 : index
    %1 = memref.load %arg1[%c0_0] : memref<4xf32, #tpu.memory_space<smem>>
    %2 = arith.mulf %0, %1 : f32
    %c1 = arith.constant 1 : index
    %3 = memref.load %arg0[%c1] : memref<4xf32, #tpu.memory_space<smem>>
    %c1_1 = arith.constant 1 : index
    %4 = memref.load %arg1[%c1_1] : memref<4xf32, #tpu.memory_space<smem>>
    %5 = arith.mulf %3, %4 : f32
    %6 = arith.addf %2, %5 : f32
    %c2 = arith.constant 2 : index
    %7 = memref.load %arg0[%c2] : memref<4xf32, #tpu.memory_space<smem>>
    %c2_2 = arith.constant 2 : index
    %8 = memref.load %arg1[%c2_2] : memref<4xf32, #tpu.memory_space<smem>>
    %9 = arith.mulf %7, %8 : f32
    %10 = arith.addf %6, %9 : f32
    %c3 = arith.constant 3 : index
    %11 = memref.load %arg0[%c3] : memref<4xf32, #tpu.memory_space<smem>>
    %c3_3 = arith.constant 3 : index
    %12 = memref.load %arg1[%c3_3] : memref<4xf32, #tpu.memory_space<smem>>
    %13 = arith.mulf %11, %12 : f32
    %14 = arith.addf %10, %13 : f32
    %c0_4 = arith.constant 0 : index
    %c0_5 = arith.constant 0 : index
    %15 = memref.load %arg2[%c0_4, %c0_5] : memref<1x1xf32, #tpu.memory_space<smem>>
    memref.store %14, %arg2[%c0_4, %c0_5] : memref<1x1xf32, #tpu.memory_space<smem>>
    return
  }
}

</mosaic_0001>

<bundles_post_ra>
// kernel: tpu_custom_call.1
= control target key start
LH: loop header
LB: loop body
LE: loop exit
PB: predicated region body
PF: predicated region fallthrough
CT: control target
= control target key end

     0   :  { %7 = vsyncpa [#allocation3], 0  ;;  %s137_s0 = inlined_call_operand.hbm [shape: f32[4], index: 0, kind: input, shape index: {}]   ;;  %s138_s1 = inlined_call_operand.vmem [shape: f32[4], index: 1, kind: input, shape index: {}]   ;;  %s139_s2 = inlined_call_operand.hbm [shape: f32[1,1], index: 2, kind: output, shape index: {}]  }
   0x1   :  { %8 = vsyncpa [#allocation5], 0 }
   0x2   :  { %9 = vsyncpa [#allocation4], 0  ;;  %s24_s11 = sshll.u32 %s138_s1, 4  ;;  %s110_s12 = smov [#allocation2]   ;;  %s25_s11 = int_to_ptr.vmem [resolvable:$true] %s24_s11 }
   0x3   :  { %17 = dma.hbm_to_smem %s137_s0, 16, %s110_s12, [#allocation3]  }
   0x4   :  { %s84_s15 = scalar_lea.vmem %s25_s11, 16  ;;  %p89_p1 = scmp.lt.s32.totalorder %s25_s11, %s25_s11 }
   0x5   :  { %p85_p0 = scmp.ne.s32.totalorder %s25_s11, %s84_s15  ;;  %p90_p2 = scmp.lt.s32.totalorder %s84_s15, %s84_s15 }
   0x7   :  { %p91_p3 = por %p90_p2, %p89_p1 }
   0x9   :  { %p92_p4 = pnand %p91_p3, %p85_p0 }
   0xb   :  { %95 = shalt.err (!%p92_p4)
}
   0xc   :  { %s111_s16 = smov [#allocation6]  }
   0xd   :  { %27 = dma.vmem_to_smem %s25_s11, 16, %s111_s16, [#allocation5]  }
   0xe   :  { %104 = dma.done.wait [#allocation3], 16  }
   0xf   :  { %105 = vsyncadd [#allocation3], 4294967280 }
  0x10   :  { %106 = dma.done.wait [#allocation5], 16  }
  0x11   :  { %107 = vsyncadd [#allocation5], 4294967280 }
  0x12   :  { %34 = sfence }
  0x13   :  { %s35_s1 = sld [smem:[#allocation2]]  ;;  %s112_s30 = smov [#allocation7]  }
  0x14   :  { %s36_s17 = sld [smem:[#allocation6]] }
  0x15   :  { %s67_s18 = sld [smem:[#allocation2 + $0x1]] }
  0x16   :  { %s68_s19 = sld [smem:[#allocation6 + $0x1]] }
  0x17   :  { %s69_s0 = sld [smem:[#allocation2 + $0x2]] }
  0x18   :  { %s70_s20 = sld [smem:[#allocation6 + $0x2]] }
  0x19   :  { %s71_s21 = sld [smem:[#allocation2 + $0x3]] }
  0x1a   :  { %s37_s22 = smul.f32 %s36_s17, %s35_s1  ;;  %s72_s23 = sld [smem:[#allocation6 + $0x3]] }
  0x1c   :  { %s40_s24 = smul.f32 %s68_s19, %s67_s18 }
  0x1e   :  { %s41_s25 = sadd.f32 %s40_s24, %s37_s22  ;;  %s44_s26 = smul.f32 %s70_s20, %s69_s0 }
  0x20   :  { %s45_s27 = sadd.f32 %s44_s26, %s41_s25  ;;  %s48_s28 = smul.f32 %s72_s23, %s71_s21 }
  0x22   :  { %s49_s29 = sadd.f32 %s48_s28, %s45_s27 }
  0x24   :  { %51 = sst [smem:[#allocation7]] %s49_s29 }
  0x25   :  { %59 = dma.smem_to_hbm %s112_s30, 16, %s139_s2, [#allocation4]  }
  0x26   :  { %108 = dma.done.wait [#allocation4], 16  }
  0x27   :  { %109 = vsyncadd [#allocation4], 4294967280 }
  0x28   :  { %63 = sfence }
  0x29   :  { %64 = vsyncpa [#allocation3], 1 }
  0x2a   :  { %65 = vsyncpa [#allocation4], 1 }
  0x2b   :  { %66 = vsyncpa [#allocation5], 1 }

</bundles_post_ra>
